<compile_context>
chip_gen: v7x
topology: tpu7x:2x2x1
jax: 0.10.0
libtpu: 0.0.40
codegen_flags: <defaults>
</compile_context>

<pallas_src>
import functools

import jax
import jax.numpy as jnp
from jax import lax
from jax.experimental import pallas as pl
from jax.experimental.pallas import tpu as pltpu


_EPS = 1e-10          # matches nn.LayerNorm(..., eps=1e-10) in the PyTorch module
_LANE = 128
_SUBLANE = 8


def _round_up(x, m):
    return ((x + m - 1) // m) * m


def _gelu(x, approximate):
    if approximate:
        # tanh-approximate GELU: lowers to the EUP (frees VPU slots where this
        # kernel is VALU-bound, e.g. v7x).  ~1e-3 numeric delta vs exact GELU.
        return jax.nn.gelu(x, approximate=True)
    # torch.nn.functional.gelu default (approximate='none'): 0.5*x*(1+erf(x/sqrt(2)))
    return 0.5 * x * (1.0 + lax.erf(x * 0.7071067811865475))


def _layernorm_fused(x, gamma, beta):
    # Single reduction pass: var = max(E[x^2] - mu^2, 0).  Clamp before rsqrt —
    # eps=1e-10 is too small to cover f32 cancellation error.
    mu = jnp.mean(x, axis=-1, keepdims=True)
    ex2 = jnp.mean(x * x, axis=-1, keepdims=True)
    var = jnp.maximum(ex2 - mu * mu, 0.0)
    return (x - mu) * lax.rsqrt(var + _EPS) * gamma + beta


def classifi_kernel(x_ref,
                    ln1_w_ref, ln1_b_ref,
                    w1_ref, b1_ref,
                    ln2_w_ref, ln2_b_ref,
                    w2_ref, b2_ref,
                    out_ref,
                    *, approximate_gelu):
    # One (tm, in_ch) row tile; all params are already f32 and resident in VMEM.
    x = x_ref[...].astype(jnp.float32)

    # node = gelu(layernorm1(node))
    h = _gelu(_layernorm_fused(x, ln1_w_ref[...], ln1_b_ref[...]), approximate_gelu)

    # dropout (eval mode) -> identity
    # TODO(synk): training-mode dropout (pltpu.prng_random_bits mask) not implemented.

    # node = linear1(node)
    h = jnp.dot(h, w1_ref[...], preferred_element_type=jnp.float32) + b1_ref[...]

    # node = gelu(layernorm2(node))
    h = _gelu(_layernorm_fused(h, ln2_w_ref[...], ln2_b_ref[...]), approximate_gelu)

    # inconsist_type = linear2(node)  (output columns zero-padded to lane width)
    out = jnp.dot(h, w2_ref[...], preferred_element_type=jnp.float32) + b2_ref[...]

    out_ref[...] = out.astype(out_ref.dtype)


@functools.partial(
    jax.jit, static_argnames=("block_rows", "unpad_output", "approximate_gelu"))
def classifi_layer(x, ln1_w, ln1_b, w1, b1, ln2_w, ln2_b, w2, b2,
                   *, block_rows=2048, unpad_output=False, approximate_gelu=False):
    n, in_ch = x.shape
    mlp_dim = w1.shape[1]
    num_classes = w2.shape[1]

    # Hoist parameter casts out of the kernel body: params never change per tile.
    f32 = lambda a: jnp.asarray(a, jnp.float32)
    ln1_w, ln1_b, w1, b1, ln2_w, ln2_b = map(
        f32, (ln1_w, ln1_b, w1, b1, ln2_w, ln2_b))

    # Lane-dense output: pad num_classes up to a multiple of 128 with zero cols
    # (unmasked stores, full MXU N dim).  Padding columns of the result are 0.
    out_pad = _round_up(num_classes, _LANE)
    w2p = jnp.zeros((mlp_dim, out_pad), jnp.float32).at[:, :num_classes].set(f32(w2))
    b2p = jnp.zeros((1, out_pad), jnp.float32).at[:, :num_classes].set(f32(b2))

    # Row tile: multiple of 8 (f32 sublane).  Cap at ~n/2 so the row grid has
    # >= 2 steps for small/medium N (megacore sharding on v7x).  No jnp.pad of
    # x — the partial last block is masked by Pallas.
    tm = max(_SUBLANE, min(block_rows, _round_up(pl.cdiv(n, 2), _SUBLANE)))
    grid = (pl.cdiv(n, tm),)

    def resident(arr):
        # Whole-array block, same block every grid step -> stays in VMEM.
        return pl.BlockSpec(arr.shape, lambda i: (0,) * arr.ndim)

    out = pl.pallas_call(
        functools.partial(classifi_kernel, approximate_gelu=approximate_gelu),
        out_shape=jax.ShapeDtypeStruct((n, out_pad), x.dtype),
        grid=grid,
        in_specs=[
            pl.BlockSpec((tm, in_ch), lambda i: (i, 0)),   # x: row tiles
            resident(ln1_w), resident(ln1_b),
            resident(w1), resident(b1),
            resident(ln2_w), resident(ln2_b),
            resident(w2p), resident(b2p),
        ],
        out_specs=pl.BlockSpec((tm, out_pad), lambda i: (i, 0)),
        compiler_params=pltpu.CompilerParams(
            dimension_semantics=("parallel",),   # megacore sharding on v7x
            # default scoped VMEM is ample (working set is a few MiB)
        ),
    )(x, ln1_w, ln1_b, w1, b1, ln2_w, ln2_b, w2p, b2p)

    if unpad_output:
        # Drop-in (n, num_classes) shape.  Costs one extra HBM pass over the
        # output; prefer consuming out[:, :num_classes] lazily downstream.
        out = out[:, :num_classes]
    return out


def init_params(key, in_channels, mlp_dim, num_classes, dtype=jnp.float32):
    """Deterministic init mirroring the PyTorch module's parameter shapes."""
    k1, k2, k3, k4 = jax.random.split(key, 4)
    # LayerNorm elementwise_affine=True -> weight=1, bias=0  (stored as (1, dim))
    ln1_w = jnp.ones((1, in_channels), dtype)
    ln1_b = jnp.zeros((1, in_channels), dtype)
    ln2_w = jnp.ones((1, mlp_dim), dtype)
    ln2_b = jnp.zeros((1, mlp_dim), dtype)
    # nn.Linear init: U(-1/sqrt(fan_in), 1/sqrt(fan_in)); stored as (in, out)
    bound1 = 1.0 / jnp.sqrt(in_channels)
    w1 = jax.random.uniform(k1, (in_channels, mlp_dim), dtype, -bound1, bound1)
    b1 = jax.random.uniform(k2, (1, mlp_dim), dtype, -bound1, bound1)
    bound2 = 1.0 / jnp.sqrt(mlp_dim)
    w2 = jax.random.uniform(k3, (mlp_dim, num_classes), dtype, -bound2, bound2)
    b2 = jax.random.uniform(k4, (1, num_classes), dtype, -bound2, bound2)
    return ln1_w, ln1_b, w1, b1, ln2_w, ln2_b, w2, b2


def _layernorm_ref(x, gamma, beta):
    mu = jnp.mean(x, axis=-1, keepdims=True)
    var = jnp.mean((x - mu) ** 2, axis=-1, keepdims=True)
    return (x - mu) * lax.rsqrt(var + _EPS) * gamma + beta


def reference_forward(x, ln1_w, ln1_b, w1, b1, ln2_w, ln2_b, w2, b2):
    """Pure-JAX reference of the PyTorch forward (eval mode, exact GELU)."""
    h = _gelu(_layernorm_ref(x.astype(jnp.float32), ln1_w, ln1_b), False)
    h = h @ w1 + b1
    h = _gelu(_layernorm_ref(h, ln2_w, ln2_b), False)
    return h @ w2 + b2


if __name__ == "__main__":
    IN_CH, MLP_DIM, NUM_CLASSES = 32, 64, 10
    key = jax.random.PRNGKey(0)
    kp, k1, k2, k3 = jax.random.split(key, 4)
    params = init_params(kp, IN_CH, MLP_DIM, NUM_CLASSES)

    def check(x, **kw):
        out = jax.block_until_ready(classifi_layer(x, *params, **kw))
        ref = reference_forward(x, *params)
        assert out.shape[0] == x.shape[0] and out.shape[1] >= NUM_CLASSES, out.shape
        got = out[:, :NUM_CLASSES]
        err = float(jnp.max(jnp.abs(got - ref)))
        assert jnp.allclose(got, ref, atol=3e-5, rtol=1e-5), err
        if out.shape[1] > NUM_CLASSES:
            # zero-padded w2/b2 columns -> padded output columns are exactly 0
            assert jnp.allclose(out[:, NUM_CLASSES:], 0.0, atol=1e-6)

    # Small single-tile case.
    check(jax.random.normal(k1, (8, IN_CH), jnp.float32))

    # Multi-tile case with a partial last block (exercises row grid + masking).
    check(jax.random.normal(k2, (200, IN_CH), jnp.float32), block_rows=64)

    # Row count not a multiple of 8, default tiling (2-step grid, masked tail).
    check(jax.random.normal(k3, (13, IN_CH), jnp.float32))

    # Drop-in (n, num_classes) output shape (extra HBM pass, opt-in).
    out = jax.block_until_ready(
        classifi_layer(jax.random.normal(k1, (8, IN_CH), jnp.float32), *params,
                       unpad_output=True))
    assert out.shape == (8, NUM_CLASSES), out.shape

    print("KERNEL_OK")
</pallas_src>

<mosaic_0001>
module attributes {stable_mosaic.version = 11 : i64} {
  func.func @classifi_kernel(%arg0: i32, %arg1: memref<8x32xf32, #tpu.memory_space<vmem>>, %arg2: memref<1x32xf32, #tpu.memory_space<vmem>>, %arg3: memref<1x32xf32, #tpu.memory_space<vmem>>, %arg4: memref<32x64xf32, #tpu.memory_space<vmem>>, %arg5: memref<1x64xf32, #tpu.memory_space<vmem>>, %arg6: memref<1x64xf32, #tpu.memory_space<vmem>>, %arg7: memref<1x64xf32, #tpu.memory_space<vmem>>, %arg8: memref<64x128xf32, #tpu.memory_space<vmem>>, %arg9: memref<1x128xf32, #tpu.memory_space<vmem>>, %arg10: memref<8x128xf32, #tpu.memory_space<vmem>>) attributes {dimension_semantics = [#tpu.dimension_semantics<parallel>], iteration_bounds = array<i64: 1>, scalar_prefetch = 0 : i64, scratch_operands = 0 : i64, tpu.core_type = #tpu.core_type<tc>, window_params = [{transform_indices = @transform_0, window_bounds = array<i64: 8, 32>}, {pipeline_mode = #tpu.pipeline_mode<synchronous>, transform_indices = @transform_1, window_bounds = array<i64: 1, 32>}, {pipeline_mode = #tpu.pipeline_mode<synchronous>, transform_indices = @transform_2, window_bounds = array<i64: 1, 32>}, {pipeline_mode = #tpu.pipeline_mode<synchronous>, transform_indices = @transform_3, window_bounds = array<i64: 32, 64>}, {pipeline_mode = #tpu.pipeline_mode<synchronous>, transform_indices = @transform_4, window_bounds = array<i64: 1, 64>}, {pipeline_mode = #tpu.pipeline_mode<synchronous>, transform_indices = @transform_5, window_bounds = array<i64: 1, 64>}, {pipeline_mode = #tpu.pipeline_mode<synchronous>, transform_indices = @transform_6, window_bounds = array<i64: 1, 64>}, {pipeline_mode = #tpu.pipeline_mode<synchronous>, transform_indices = @transform_7, window_bounds = array<i64: 64, 128>}, {pipeline_mode = #tpu.pipeline_mode<synchronous>, transform_indices = @transform_8, window_bounds = array<i64: 1, 128>}, {transform_indices = @transform_9, window_bounds = array<i64: 8, 128>}]} {
    %c0 = arith.constant 0 : index
    %c0_0 = arith.constant 0 : index
    %0 = vector.load %arg1[%c0, %c0_0] : memref<8x32xf32, #tpu.memory_space<vmem>>, vector<8x32xf32>
    %c0_1 = arith.constant 0 : index
    %c0_2 = arith.constant 0 : index
    %1 = vector.load %arg2[%c0_1, %c0_2] : memref<1x32xf32, #tpu.memory_space<vmem>>, vector<1x32xf32>
    %c0_3 = arith.constant 0 : index
    %c0_4 = arith.constant 0 : index
    %2 = vector.load %arg3[%c0_3, %c0_4] : memref<1x32xf32, #tpu.memory_space<vmem>>, vector<1x32xf32>
    %cst = arith.constant dense<0.000000e+00> : vector<8xf32>
    %3 = vector.multi_reduction <add>, %0, %cst [1] : vector<8x32xf32> to vector<8xf32>
    %4 = vector.shape_cast %3 : vector<8xf32> to vector<8x1xf32>
    %cst_5 = arith.constant 3.200000e+01 : f32
    %5 = vector.broadcast %cst_5 : f32 to vector<8x1xf32>
    %6 = arith.divf %4, %5 : vector<8x1xf32>
    %7 = arith.mulf %0, %0 : vector<8x32xf32>
    %cst_6 = arith.constant dense<0.000000e+00> : vector<8xf32>
    %8 = vector.multi_reduction <add>, %7, %cst_6 [1] : vector<8x32xf32> to vector<8xf32>
    %9 = vector.shape_cast %8 : vector<8xf32> to vector<8x1xf32>
    %cst_7 = arith.constant 3.200000e+01 : f32
    %10 = vector.broadcast %cst_7 : f32 to vector<8x1xf32>
    %11 = arith.divf %9, %10 : vector<8x1xf32>
    %12 = arith.mulf %6, %6 : vector<8x1xf32>
    %13 = arith.subf %11, %12 : vector<8x1xf32>
    %cst_8 = arith.constant 0.000000e+00 : f32
    %14 = vector.broadcast %cst_8 : f32 to vector<8x1xf32>
    %15 = arith.maximumf %13, %14 : vector<8x1xf32>
    %16 = vector.broadcast %6 : vector<8x1xf32> to vector<8x32xf32>
    %17 = arith.subf %0, %16 : vector<8x32xf32>
    %cst_9 = arith.constant 1.000000e-10 : f32
    %18 = vector.broadcast %cst_9 : f32 to vector<8x1xf32>
    %19 = arith.addf %15, %18 : vector<8x1xf32>
    %20 = math.rsqrt %19 : vector<8x1xf32>
    %21 = vector.broadcast %20 : vector<8x1xf32> to vector<8x32xf32>
    %22 = arith.mulf %17, %21 : vector<8x32xf32>
    %23 = vector.broadcast %1 : vector<1x32xf32> to vector<8x32xf32>
    %24 = arith.mulf %22, %23 : vector<8x32xf32>
    %25 = vector.broadcast %2 : vector<1x32xf32> to vector<8x32xf32>
    %26 = arith.addf %24, %25 : vector<8x32xf32>
    %cst_10 = arith.constant 5.000000e-01 : f32
    %27 = vector.broadcast %cst_10 : f32 to vector<8x32xf32>
    %28 = arith.mulf %27, %26 : vector<8x32xf32>
    %cst_11 = arith.constant 0.707106769 : f32
    %29 = vector.broadcast %cst_11 : f32 to vector<8x32xf32>
    %30 = arith.mulf %26, %29 : vector<8x32xf32>
    %31 = math.erf %30 : vector<8x32xf32>
    %cst_12 = arith.constant 1.000000e+00 : f32
    %32 = vector.broadcast %cst_12 : f32 to vector<8x32xf32>
    %33 = arith.addf %32, %31 : vector<8x32xf32>
    %34 = arith.mulf %28, %33 : vector<8x32xf32>
    %c0_13 = arith.constant 0 : index
    %c0_14 = arith.constant 0 : index
    %35 = vector.load %arg4[%c0_13, %c0_14] : memref<32x64xf32, #tpu.memory_space<vmem>>, vector<32x64xf32>
    %cst_15 = arith.constant dense<0.000000e+00> : vector<8x64xf32>
    %36 = tpu.matmul %34, %35, %cst_15 {dimension_numbers = #tpu.dot_dimension_numbers<[1], [0], [0], [1], [0, 0, 1, 1], [], []>} : vector<8x32xf32>, vector<32x64xf32>, vector<8x64xf32> -> vector<8x64xf32>
    %c0_16 = arith.constant 0 : index
    %c0_17 = arith.constant 0 : index
    %37 = vector.load %arg5[%c0_16, %c0_17] : memref<1x64xf32, #tpu.memory_space<vmem>>, vector<1x64xf32>
    %38 = vector.broadcast %37 : vector<1x64xf32> to vector<8x64xf32>
    %39 = arith.addf %36, %38 : vector<8x64xf32>
    %c0_18 = arith.constant 0 : index
    %c0_19 = arith.constant 0 : index
    %40 = vector.load %arg6[%c0_18, %c0_19] : memref<1x64xf32, #tpu.memory_space<vmem>>, vector<1x64xf32>
    %c0_20 = arith.constant 0 : index
    %c0_21 = arith.constant 0 : index
    %41 = vector.load %arg7[%c0_20, %c0_21] : memref<1x64xf32, #tpu.memory_space<vmem>>, vector<1x64xf32>
    %cst_22 = arith.constant dense<0.000000e+00> : vector<8xf32>
    %42 = vector.multi_reduction <add>, %39, %cst_22 [1] : vector<8x64xf32> to vector<8xf32>
    %43 = vector.shape_cast %42 : vector<8xf32> to vector<8x1xf32>
    %cst_23 = arith.constant 6.400000e+01 : f32
    %44 = vector.broadcast %cst_23 : f32 to vector<8x1xf32>
    %45 = arith.divf %43, %44 : vector<8x1xf32>
    %46 = arith.mulf %39, %39 : vector<8x64xf32>
    %cst_24 = arith.constant dense<0.000000e+00> : vector<8xf32>
    %47 = vector.multi_reduction <add>, %46, %cst_24 [1] : vector<8x64xf32> to vector<8xf32>
    %48 = vector.shape_cast %47 : vector<8xf32> to vector<8x1xf32>
    %cst_25 = arith.constant 6.400000e+01 : f32
    %49 = vector.broadcast %cst_25 : f32 to vector<8x1xf32>
    %50 = arith.divf %48, %49 : vector<8x1xf32>
    %51 = arith.mulf %45, %45 : vector<8x1xf32>
    %52 = arith.subf %50, %51 : vector<8x1xf32>
    %cst_26 = arith.constant 0.000000e+00 : f32
    %53 = vector.broadcast %cst_26 : f32 to vector<8x1xf32>
    %54 = arith.maximumf %52, %53 : vector<8x1xf32>
    %55 = vector.broadcast %45 : vector<8x1xf32> to vector<8x64xf32>
    %56 = arith.subf %39, %55 : vector<8x64xf32>
    %cst_27 = arith.constant 1.000000e-10 : f32
    %57 = vector.broadcast %cst_27 : f32 to vector<8x1xf32>
    %58 = arith.addf %54, %57 : vector<8x1xf32>
    %59 = math.rsqrt %58 : vector<8x1xf32>
    %60 = vector.broadcast %59 : vector<8x1xf32> to vector<8x64xf32>
    %61 = arith.mulf %56, %60 : vector<8x64xf32>
    %62 = vector.broadcast %40 : vector<1x64xf32> to vector<8x64xf32>
    %63 = arith.mulf %61, %62 : vector<8x64xf32>
    %64 = vector.broadcast %41 : vector<1x64xf32> to vector<8x64xf32>
    %65 = arith.addf %63, %64 : vector<8x64xf32>
    %cst_28 = arith.constant 5.000000e-01 : f32
    %66 = vector.broadcast %cst_28 : f32 to vector<8x64xf32>
    %67 = arith.mulf %66, %65 : vector<8x64xf32>
    %cst_29 = arith.constant 0.707106769 : f32
    %68 = vector.broadcast %cst_29 : f32 to vector<8x64xf32>
    %69 = arith.mulf %65, %68 : vector<8x64xf32>
    %70 = math.erf %69 : vector<8x64xf32>
    %cst_30 = arith.constant 1.000000e+00 : f32
    %71 = vector.broadcast %cst_30 : f32 to vector<8x64xf32>
    %72 = arith.addf %71, %70 : vector<8x64xf32>
    %73 = arith.mulf %67, %72 : vector<8x64xf32>
    %c0_31 = arith.constant 0 : index
    %c0_32 = arith.constant 0 : index
    %74 = vector.load %arg8[%c0_31, %c0_32] : memref<64x128xf32, #tpu.memory_space<vmem>>, vector<64x128xf32>
    %cst_33 = arith.constant dense<0.000000e+00> : vector<8x128xf32>
    %75 = tpu.matmul %73, %74, %cst_33 {dimension_numbers = #tpu.dot_dimension_numbers<[1], [0], [0], [1], [0, 0, 1, 1], [], []>} : vector<8x64xf32>, vector<64x128xf32>, vector<8x128xf32> -> vector<8x128xf32>
    %c0_34 = arith.constant 0 : index
    %c0_35 = arith.constant 0 : index
    %76 = vector.load %arg9[%c0_34, %c0_35] : memref<1x128xf32, #tpu.memory_space<vmem>>, vector<1x128xf32>
    %77 = vector.broadcast %76 : vector<1x128xf32> to vector<8x128xf32>
    %78 = arith.addf %75, %77 : vector<8x128xf32>
    %c0_36 = arith.constant 0 : index
    %c0_37 = arith.constant 0 : index
    %79 = vector.load %arg10[%c0_36, %c0_37] : memref<8x128xf32, #tpu.memory_space<vmem>>, vector<8x128xf32>
    tpu.vector_store %arg10[%c0_36, %c0_37], %78 {strides = array<i32>} : memref<8x128xf32, #tpu.memory_space<vmem>>, vector<8x128xf32>,
    return
  }
  func.func @transform_0(%arg0: i32) -> (i32, i32) {
    %c0_i32 = arith.constant 0 : i32
    %c0_i32_0 = arith.constant 0 : i32
    return %arg0, %c0_i32 : i32, i32
  }
  func.func @transform_1(%arg0: i32) -> (i32, i32) {
    %c0_i32 = arith.constant 0 : i32
    %c0_i32_0 = arith.constant 0 : i32
    %c0_i32_1 = arith.constant 0 : i32
    return %c0_i32, %c0_i32_0 : i32, i32
  }
  func.func @transform_2(%arg0: i32) -> (i32, i32) {
    %c0_i32 = arith.constant 0 : i32
    %c0_i32_0 = arith.constant 0 : i32
    %c0_i32_1 = arith.constant 0 : i32
    return %c0_i32, %c0_i32_0 : i32, i32
  }
  func.func @transform_3(%arg0: i32) -> (i32, i32) {
    %c0_i32 = arith.constant 0 : i32
    %c0_i32_0 = arith.constant 0 : i32
    %c0_i32_1 = arith.constant 0 : i32
    return %c0_i32, %c0_i32_0 : i32, i32
  }
  func.func @transform_4(%arg0: i32) -> (i32, i32) {
    %c0_i32 = arith.constant 0 : i32
    %c0_i32_0 = arith.constant 0 : i32
    %c0_i32_1 = arith.constant 0 : i32
    return %c0_i32, %c0_i32_0 : i32, i32
  }
  func.func @transform_5(%arg0: i32) -> (i32, i32) {
    %c0_i32 = arith.constant 0 : i32
    %c0_i32_0 = arith.constant 0 : i32
    %c0_i32_1 = arith.constant 0 : i32
    return %c0_i32, %c0_i32_0 : i32, i32
  }
  func.func @transform_6(%arg0: i32) -> (i32, i32) {
    %c0_i32 = arith.constant 0 : i32
    %c0_i32_0 = arith.constant 0 : i32
    %c0_i32_1 = arith.constant 0 : i32
    return %c0_i32, %c0_i32_0 : i32, i32
  }
  func.func @transform_7(%arg0: i32) -> (i32, i32) {
    %c0_i32 = arith.constant 0 : i32
    %c0_i32_0 = arith.constant 0 : i32
    %c0_i32_1 = arith.constant 0 : i32
    return %c0_i32, %c0_i32_0 : i32, i32
  }
  func.func @transform_8(%arg0: i32) -> (i32, i32) {
    %c0_i32 = arith.constant 0 : i32
    %c0_i32_0 = arith.constant 0 : i32
    %c0_i32_1 = arith.constant 0 : i32
    return %c0_i32, %c0_i32_0 : i32, i32
  }
  func.func @transform_9(%arg0: i32) -> (i32, i32) {
    %c0_i32 = arith.constant 0 : i32
    %c0_i32_0 = arith.constant 0 : i32
    return %arg0, %c0_i32 : i32, i32
  }
}

</mosaic_0001>

<bundles_post_ra>
// kernel: classifi_layer.1
= control target key start
LH: loop header
LB: loop body
LE: loop exit
PB: predicated region body
PF: predicated region fallthrough
CT: control target
= control target key end

     0   :  { %vm36_vm0 = vcmask 261120   ;;  %s540_s0 = inlined_call_operand.vmem [shape: f32[8,32], index: 0, kind: input, shape index: {}]   ;;  %s541_s1 = inlined_call_operand.vmem [shape: f32[1,32], index: 1, kind: input, shape index: {}]   ;;  %s542_s2 = inlined_call_operand.vmem [shape: f32[1,32], index: 2, kind: input, shape index: {}]   ;;  %s543_s3 = inlined_call_operand.vmem [shape: f32[32,64], index: 3, kind: input, shape index: {}]   ;;  %s544_s4 = inlined_call_operand.vmem [shape: f32[1,64], index: 4, kind: input, shape index: {}]   ;;  %s545_s5 = inlined_call_operand.vmem [shape: f32[1,64], index: 5, kind: input, shape index: {}]   ;;  %s546_s6 = inlined_call_operand.vmem [shape: f32[1,64], index: 6, kind: input, shape index: {}]   ;;  %s547_s7 = inlined_call_operand.vmem [shape: f32[64,128], index: 7, kind: input, shape index: {}]   ;;  %s548_s8 = inlined_call_operand.vmem [shape: f32[1,128], index: 8, kind: input, shape index: {}]   ;;  %s549_s9 = inlined_call_operand.hbm [shape: f32[8,128], index: 9, kind: output, shape index: {}]  }
   0x1   :  { %v33_v0 = vld [vmem:[%s540_s0] sm:$0xff] }
   0x2   :  { %14 = vsyncpa [#allocation3], 0  ;;  %v37_v1 = vsel %vm36_vm0, %v33_v0, 0.0  ;;  %v42_v2 = vmul.f32 %v33_v0, %v33_v0  ;;  %v73_v4 = vld [vmem:[%s543_s3] sm:$0xff]  ;;  %v74_v5 = vld [vmem:[%s543_s3 + $0x8] sm:$0xff]  ;;  %v405_v7 = vmov 0.0|0.0  }
   0x3   :  { %38 = vadd.xlane.f32.xlu0 %v37_v1  ;;  %v75_v6 = vld [vmem:[%s543_s3 + $0x10] sm:$0xff]  ;;  %351 = vmatprep.subr.bf16.mxu0 %v405_v7  ;;  %v352_v8 = vpack.c.bf16 %v74_v5, %v73_v4  ;;  %v76_v9 = vld [vmem:[%s543_s3 + $0x18] sm:$0xff]  ;;  %vm406_vm1 = vmmov 0   ;;  %v407_v10 = vmov 0.0   ;;  %v299_v22 = vld [vmem:[%s541_s1] ss:$0 sm:$0xff] }
   0x4   :  { %v43_v3 = vsel %vm36_vm0, %v42_v2, 0.0  ;;  %329 = vmatprep.mubr.msk.f32.mxu0 %vm406_vm1, %v407_v10  ;;  %357 = vmatprep.subr.bf16.mxu1 %v405_v7  ;;  %v355_v11 = vpack.c.bf16 %v76_v9, %v75_v6  ;;  %v300_v24 = vld [vmem:[%s542_s2] ss:$0 sm:$0xff]  ;;  %vm159_vm2 = vcmask 523264   ;;  %v197_v40 = vld [vmem:[%s547_s7 + $0x8] sm:$0xff]  ;;  %v198_v41 = vld [vmem:[%s547_s7 + $0x10] sm:$0xff] }
   0x5   :  { %348 = vmatprep.mubr.msk.f32.mxu1 %vm406_vm1, %v407_v10  ;;  %353 = vmatpush3.bf16.msra.mxu0 %v352_v8  ;;  %v301_v32 = vld [vmem:[%s544_s4] ss:$0 sm:$0xff]  ;;  %v199_v43 = vld [vmem:[%s547_s7 + $0x18] sm:$0xff]  ;;  %v201_v46 = vld [vmem:[%s547_s7 + $0x28] sm:$0xff] }
   0x6   :  { %354 = vmatprep.subr.bf16.mxu0 %v405_v7  ;;  %v196_v39 = vld [vmem:[%s547_s7] sm:$0xff]  ;;  %v361_v44 = vpack.c.bf16 %v199_v43, %v198_v41  ;;  %v202_v48 = vld [vmem:[%s547_s7 + $0x30] sm:$0xff]  ;;  %v203_v49 = vld [vmem:[%s547_s7 + $0x38] sm:$0xff] }
   0x7   :  { %44 = vadd.xlane.f32.xlu0 %v43_v3  ;;  %v358_v42 = vpack.c.bf16 %v197_v40, %v196_v39  ;;  %v200_v45 = vld [vmem:[%s547_s7 + $0x20] sm:$0xff]  ;;  %v367_v50 = vpack.c.bf16 %v203_v49, %v202_v48 }
   0x8   :  { %v364_v47 = vpack.c.bf16 %v201_v46, %v200_v45  ;;  %v303_v61 = vld [vmem:[%s545_s5] ss:$0 sm:$0xff]  ;;  %s408_s5 = smov [#allocation2]  }
   0x9   :  { %356 = vmatpush3.bf16.msra.mxu0 %v355_v11  ;;  %359 = vmatpush3.bf16.msra.mxu1 %v358_v42  ;;  %v304_v63 = vld [vmem:[%s546_s6] ss:$0 sm:$0xff]  ;;  %s291_s18 = sshll.u32 %s408_s5, 4  ;;  %s292_s18 = int_to_ptr.vmem [resolvable:$true] %s291_s18 }
   0xa   :  { %360 = vmatprep.subr.bf16.mxu1 %v405_v7  ;;  %s381_s6 = scalar_lea.vmem %s292_s18, 128  ;;  %p386_p1 = scmp.lt.s32.totalorder %s292_s18, %s292_s18 }
   0xb   :  { %p382_p0 = scmp.ne.s32.totalorder %s292_s18, %s381_s6  ;;  %p387_p2 = scmp.lt.s32.totalorder %s381_s6, %s381_s6 }
   0xd   :  { %362 = vmatpush3.bf16.msra.mxu1 %v361_v44  ;;  %p388_p3 = por %p387_p2, %p386_p1 }
   0xe   :  { %363 = vmatprep.subr.bf16.mxu1 %v405_v7 }
   0xf   :  { %p389_p4 = pnand %p388_p3, %p382_p0 }
  0x11   :  { %365 = vmatpush3.bf16.msra.mxu1 %v364_v47 }
  0x12   :  { %366 = vmatprep.subr.bf16.mxu1 %v405_v7  ;;  %v305_v7 = vld [vmem:[%s548_s8] ss:$0 sm:$0xff] }
  0x15   :  { %368 = vmatpush3.bf16.msra.mxu1 %v367_v50 }
  0x90   :  { %v39_v12 = vpop.xlane.xlu0 %38 }
  0x91   :  { %v41_v13 = vmul.f32 0.03125, %v39_v12 }
  0x93   :  { %v47_v15 = vmul.f32 %v41_v13, %v41_v13  ;;  %v50_v20 = vsub.f32 %v33_v0, %v41_v13 }
  0x94   :  { %v45_v14 = vpop.xlane.xlu0 %44 }
  0x95   :  { %v46_v16 = vmul.f32 0.03125, %v45_v14 }
  0x97   :  { %v48_v17 = vsub.f32 %v46_v16, %v47_v15 }
  0x99   :  { %v49_v18 = vmax.f32 %v48_v17, 0.0 }
  0x9b   :  { %v51_v19 = vadd.f32 1e-10, %v49_v18 }
  0x9d   :  { %373 = vrsqrt.f32 %v51_v19 }
  0xa7   :  { %v374_v21 = vpop.eup %373 }
  0xa8   :  { %v53_v23 = vmul.f32 %v374_v21, %v50_v20 }
  0xaa   :  { %v60_v25 = vmul.f32 %v299_v22, %v53_v23 }
  0xac   :  { %v67_v26 = vadd.f32 %v300_v24, %v60_v25 }
  0xae   :  { %v69_v27 = vmul.f32 0.70710677, %v67_v26  ;;  %v68_v29 = vmul.f32 0.5, %v67_v26 }
  0xb0   :  { %375 = verf.f32 %v69_v27 }
  0xba   :  { %v376_v28 = vpop.eup %375 }
  0xbb   :  { %v71_v30 = vadd.f32 1.0, %v376_v28 }
  0xbd   :  { %v72_v31 = vmul.f32 %v71_v30, %v68_v29 }
  0xbf   :  { %330 = vmatmul.mubr.msk.f32.vlgmr.msra.gmra.mrb[0].mxu0 %vm36_vm0, %v72_v31 }
 0x192   :  { %v153_v33 = vpop.f32.mrb[0].mxu0 }
 0x193   :  { %v154_v34 = vadd.f32 %v301_v32, %v153_v33  ;;  %v331_v35 = vpop.f32.mrb[1].mxu0 }
 0x195   :  { %v160_v36 = vsel %vm159_vm2, %v154_v34, 0.0  ;;  %v165_v37 = vmul.f32 %v154_v34, %v154_v34 }
 0x196   :  { %161 = vadd.xlane.f32.xlu1 %v160_v36 }
 0x197   :  { %v166_v38 = vsel %vm159_vm2, %v165_v37, 0.0 }
 0x19a   :  { %167 = vadd.xlane.f32.xlu1 %v166_v38 }
 0x223   :  { %v162_v51 = vpop.xlane.xlu1 %161 }
 0x224   :  { %v164_v52 = vmul.f32 0.015625, %v162_v51 }
 0x226   :  { %v170_v54 = vmul.f32 %v164_v52, %v164_v52  ;;  %v173_v59 = vsub.f32 %v154_v34, %v164_v52 }
 0x227   :  { %v168_v53 = vpop.xlane.xlu1 %167 }
 0x228   :  { %v169_v55 = vmul.f32 0.015625, %v168_v53 }
 0x22a   :  { %v171_v56 = vsub.f32 %v169_v55, %v170_v54 }
 0x22c   :  { %v172_v57 = vmax.f32 %v171_v56, 0.0 }
 0x22e   :  { %v174_v58 = vadd.f32 1e-10, %v172_v57 }
 0x230   :  { %377 = vrsqrt.f32 %v174_v58 }
 0x23a   :  { %v378_v60 = vpop.eup %377 }
 0x23b   :  { %v176_v62 = vmul.f32 %v378_v60, %v173_v59 }
 0x23d   :  { %v183_v0 = vmul.f32 %v303_v61, %v176_v62 }
 0x23f   :  { %v190_v1 = vadd.f32 %v304_v63, %v183_v0 }
 0x241   :  { %v192_v2 = vmul.f32 0.70710677, %v190_v1  ;;  %v191_v4 = vmul.f32 0.5, %v190_v1 }
 0x243   :  { %379 = verf.f32 %v192_v2 }
 0x24d   :  { %v380_v3 = vpop.eup %379 }
 0x24e   :  { %v194_v5 = vadd.f32 1.0, %v380_v3 }
 0x250   :  { %v195_v6 = vmul.f32 %v194_v5, %v191_v4 }
 0x252   :  { %349 = vmatmul.mubr.msk.f32.vlgmr.msra.gmra.mrb[0].mxu1 %vm159_vm2, %v195_v6 }
 0x325   :  { %v280_v8 = vpop.f32.mrb[0].mxu1 }
 0x326   :  { %v281_v9 = vadd.f32 %v305_v7, %v280_v8  ;;  %v350_v10 = vpop.f32.mrb[1].mxu1 }
 0x328   :  { %284 = vst [vmem:[#allocation2] sm:$0xff] %v281_v9 }
 0x329   :  { %392 = shalt.err (!%p389_p4)
}
 0x32a   :  { %s393_s21 = scalar_lea.hbm %s549_s9, 128 }
 0x32b   :  { %p394_p5 = scmp.ne.s32.totalorder %s549_s9, %s393_s21  ;;  %p397_p6 = scmp.lt.u32.totalorder %s393_s21, %s549_s9 }
 0x32d   :  { %p399_p7 = pnand %p397_p6, %p394_p5 }
 0x32f   :  { %402 = shalt.err (!%p399_p7)
}
 0x330   :  { %294 = dma.vmem_to_hbm [thread:$0]  %s292_s18, 128, %s549_s9, [#allocation3]  }
 0x331   :  { %403 = dma.done.wait [#allocation3], 128  }
 0x332   :  { %404 = vsyncadd [#allocation3], 4294967168 }
 0x333   :  { %298 = vsyncpa [#allocation3], 1 }

</bundles_post_ra>
